<compile_context>
chip_gen: v7x
topology: tpu7x:2x2x1
jax: 0.10.0
libtpu: 0.0.40
codegen_flags: <defaults>
</compile_context>

<pallas_src>
import functools

import jax
import jax.numpy as jnp
from jax.experimental import pallas as pl
from jax.experimental.pallas import tpu as pltpu

LANES = 128


def _num_tensorcores():
    """Best-effort TensorCores-per-chip: 2 on v7x, 1 on v5e/v6e (and unknown)."""
    try:
        dev = jax.devices()[0]
        if dev.platform != "tpu":
            return 1
        kind = str(getattr(dev, "device_kind", "")).lower()
        # TODO(synk): on v7x, verify the leading "parallel" grid axis actually
        # shards across both TensorCores (xprof per-core activity); if not,
        # switch that axis to pltpu.CORE_PARALLEL or a pl.core_map mesh.
        return 2 if "7" in kind else 1
    except Exception:
        return 1


def _range_shrink_sum_kernel(rs_ref, tg_ref, num_ref, den_ref, acc_num, acc_den,
                             *, total_rows, tile):
    c = pl.program_id(0)            # core-split axis ("parallel")
    j = pl.program_id(1)            # sequential reduction steps per core
    steps = pl.num_programs(1)

    @pl.when(j == 0)
    def _init():
        acc_num[...] = jnp.zeros_like(acc_num)
        acc_den[...] = jnp.zeros_like(acc_den)

    # Logical (unclamped) block index.  Out-of-range blocks are clamped by the
    # input index_map onto a valid tile; they take the masked path below and
    # contribute zero.
    b = c * steps + j
    full_block = (b + 1) * tile <= total_rows

    @pl.when(full_block)
    def _fast():
        # Unmasked hot path: no iota / compare / select, just mask + fold.
        m = (tg_ref[...] >= 0).astype(jnp.float32)
        contrib = rs_ref[...].astype(jnp.float32) * m
        acc_num[...] += contrib.reshape(-1, 8, LANES).sum(axis=0)
        acc_den[...] += m.reshape(-1, 8, LANES).sum(axis=0)

    @pl.when(jnp.logical_not(full_block))
    def _masked():
        # Only the block that straddles (or lies past) the end of the data.
        row_idx = b * tile + jax.lax.broadcasted_iota(jnp.int32, (tile, LANES), 0)
        valid = row_idx < total_rows
        # where() (not a multiply) so garbage in Pallas-padded tail rows
        # (possibly NaN/Inf) can never leak into the accumulators.
        m = jnp.where(valid, (tg_ref[...] >= 0).astype(jnp.float32), 0.0)
        contrib = jnp.where(valid, rs_ref[...].astype(jnp.float32), 0.0) * m
        acc_num[...] += contrib.reshape(-1, 8, LANES).sum(axis=0)
        acc_den[...] += m.reshape(-1, 8, LANES).sum(axis=0)

    @pl.when(j == steps - 1)
    def _epilogue():
        # Single-vreg cross-lane reduce + broadcast into the lane-dense output.
        num_ref[...] = jnp.full(num_ref.shape, jnp.sum(acc_num[...]), jnp.float32)
        den_ref[...] = jnp.full(den_ref.shape, jnp.sum(acc_den[...]), jnp.float32)


def _masked_sums_jax(rs, tg):
    m = (tg >= 0).astype(jnp.float32)
    return jnp.sum(rs.astype(jnp.float32) * m), jnp.sum(m)


@functools.partial(jax.jit, static_argnames=("tile_rows",))
def range_shrink_sum(rangeShrink, targets, *, tile_rows=1024):
    """loss = sum(rangeShrink * (targets >= 0)) / sum(targets >= 0).

    tile_rows: rows (x128 lanes) streamed per grid step.  1024 saturates HBM on
    v5e/v6e; on v7x (3.2 TB/s, 64 MiB VMEM) consider 4096 — the accumulators
    are vreg-sized so the budget is just the double-buffered inputs.
    """
    assert rangeShrink.shape == targets.shape
    assert tile_rows % 8 == 0
    if jnp.issubdtype(targets.dtype, jnp.unsignedinteger):
        raise TypeError("targets must have a signed dtype; (targets >= 0) would "
                        "be trivially all-true for unsigned inputs.")

    n = rangeShrink.size
    rs_flat = jnp.ravel(rangeShrink)   # free for contiguous inputs
    tg_flat = jnp.ravel(targets)

    rows = n // LANES
    rem = n - rows * LANES

    # Tiny inputs: not worth a kernel launch.
    if rows < 8:
        num, den = _masked_sums_jax(rs_flat, tg_flat)
        loss = num / den
        return loss, {"RangeShrink Loss": loss}

    if rem:
        # Ragged tail (<128 elements) handled in plain JAX; no full-array pad.
        # NOTE: slicing the lane-aligned body still costs one copy; the common
        # lane-aligned case (rem == 0) is a zero-copy reshape.
        tail_num, tail_den = _masked_sums_jax(rs_flat[rows * LANES:],
                                              tg_flat[rows * LANES:])
        rs_body = rs_flat[: rows * LANES]
        tg_body = tg_flat[: rows * LANES]
    else:
        rs_body, tg_body = rs_flat, tg_flat

    rs2d = rs_body.reshape(rows, LANES)
    tg2d = tg_body.reshape(rows, LANES)

    # Sublane-aligned tile; the (rare) trailing partial block is masked in-kernel.
    tile = tile_rows if rows >= tile_rows else (rows // 8) * 8
    nblocks = pl.cdiv(rows, tile)
    num_cores = _num_tensorcores()
    steps = pl.cdiv(nblocks, num_cores)

    def in_map(c, j):
        # Clamp so the (at most one) out-of-range trailing block re-reads a
        # valid tile; the kernel zeroes its contribution.
        return (jnp.minimum(c * steps + j, nblocks - 1), 0)

    kernel = functools.partial(_range_shrink_sum_kernel, total_rows=rows, tile=tile)

    # Double-buffered inputs dominate VMEM; accumulators are 8 KiB total.
    in_bytes = tile * LANES * (rs2d.dtype.itemsize + tg2d.dtype.itemsize)
    vmem_needed = 2 * in_bytes + (2 << 20)
    vmem_limit = int(vmem_needed) if vmem_needed > (12 << 20) else None

    num_parts, den_parts = pl.pallas_call(
        kernel,
        out_shape=(
            jax.ShapeDtypeStruct((num_cores, 8, LANES), jnp.float32),
            jax.ShapeDtypeStruct((num_cores, 8, LANES), jnp.float32),
        ),
        grid_spec=pltpu.PrefetchScalarGridSpec(
            num_scalar_prefetch=0,
            grid=(num_cores, steps),
            in_specs=[
                pl.BlockSpec((tile, LANES), in_map),
                pl.BlockSpec((tile, LANES), in_map),
            ],
            out_specs=[
                pl.BlockSpec((1, 8, LANES), lambda c, j: (c, 0, 0)),
                pl.BlockSpec((1, 8, LANES), lambda c, j: (c, 0, 0)),
            ],
            scratch_shapes=[
                pltpu.VMEM((8, LANES), jnp.float32),  # numerator accumulator (1 vreg)
                pltpu.VMEM((8, LANES), jnp.float32),  # denominator accumulator (1 vreg)
            ],
        ),
        compiler_params=pltpu.CompilerParams(
            dimension_semantics=("parallel", "arbitrary"),
            vmem_limit_bytes=vmem_limit,
        ),
    )(rs2d, tg2d)

    num = jnp.sum(num_parts[:, 0, 0])
    den = jnp.sum(den_parts[:, 0, 0])
    if rem:
        num = num + tail_num
        den = den + tail_den
    # NaN/Inf when no targets are >= 0 — matches the PyTorch reference.
    loss = num / den
    # TODO(synk): PyTorch returns loss.item() (host scalar) in the aux dict;
    # there is no in-jit equivalent, so return the JAX scalar.
    return loss, {"RangeShrink Loss": loss}


if __name__ == "__main__":
    key = jax.random.PRNGKey(0)
    k1, k2, k3, k4 = jax.random.split(key, 4)

    # Lane-aligned NCHW-like case (zero-copy fast path, unmasked hot loop).
    shape = (2, 4, 16, 16)
    rangeShrink = jax.random.normal(k1, shape, dtype=jnp.float32)
    targets = jax.random.randint(k2, shape, minval=-1, maxval=5)  # mix of valid / ignored

    loss, aux = range_shrink_sum(rangeShrink, targets)
    loss = jax.block_until_ready(loss)

    mask = (targets >= 0).astype(jnp.float32)
    ref = jnp.sum(rangeShrink * mask) / jnp.sum(mask)
    assert jnp.allclose(loss, ref, rtol=1e-5, atol=1e-5), (loss, ref)

    # Ragged case (masked last block + <128-element JAX tail).
    shape2 = (3, 5, 7, 11)  # 1155 elements -> 9 rows + 3-element tail
    rs2 = jax.random.normal(k3, shape2, dtype=jnp.float32)
    tg2 = jax.random.randint(k4, shape2, minval=-2, maxval=3)
    loss2, _ = range_shrink_sum(rs2, tg2)
    loss2 = jax.block_until_ready(loss2)

    mask2 = (tg2 >= 0).astype(jnp.float32)
    ref2 = jnp.sum(rs2 * mask2) / jnp.sum(mask2)
    assert jnp.allclose(loss2, ref2, rtol=1e-5, atol=1e-5), (loss2, ref2)

    print("KERNEL_OK")
</pallas_src>

<mosaic_0001>
module attributes {stable_mosaic.version = 11 : i64} {
  func.func @_range_shrink_sum_kernel(%arg0: i32, %arg1: i32, %arg2: memref<16x128xf32, #tpu.memory_space<vmem>>, %arg3: memref<16x128xi32, #tpu.memory_space<vmem>>, %arg4: memref<1x8x128xf32, #tpu.memory_space<vmem>>, %arg5: memref<1x8x128xf32, #tpu.memory_space<vmem>>, %arg6: memref<8x128xf32, #tpu.memory_space<vmem>>, %arg7: memref<8x128xf32, #tpu.memory_space<vmem>>) attributes {dimension_semantics = [#tpu.dimension_semantics<parallel>, #tpu.dimension_semantics<arbitrary>], iteration_bounds = array<i64: 1, 1>, scalar_prefetch = 0 : i64, scratch_operands = 2 : i64, tpu.core_type = #tpu.core_type<tc>, window_params = [{transform_indices = @transform_0, window_bounds = array<i64: 16, 128>}, {transform_indices = @transform_1, window_bounds = array<i64: 16, 128>}, {transform_indices = @transform_2, window_bounds = array<i64: 1, 8, 128>}, {transform_indices = @transform_3, window_bounds = array<i64: 1, 8, 128>}]} {
    %c0_i32 = arith.constant 0 : i32
    %0 = arith.cmpi eq, %arg1, %c0_i32 : i32
    %1 = arith.extui %0 : i1 to i32
    %c0_i32_0 = arith.constant 0 : i32
    %2 = arith.cmpi ne, %1, %c0_i32_0 : i32
    scf.if %2 {
      %cst = arith.constant 0.000000e+00 : f32
      %16 = vector.broadcast %cst : f32 to vector<8x128xf32>
      %c0 = arith.constant 0 : index
      %c0_7 = arith.constant 0 : index
      %17 = vector.load %arg6[%c0, %c0_7] : memref<8x128xf32, #tpu.memory_space<vmem>>, vector<8x128xf32>
      tpu.vector_store %arg6[%c0, %c0_7], %16 {strides = array<i32>} : memref<8x128xf32, #tpu.memory_space<vmem>>, vector<8x128xf32>,
      %cst_8 = arith.constant 0.000000e+00 : f32
      %18 = vector.broadcast %cst_8 : f32 to vector<8x128xf32>
      %c0_9 = arith.constant 0 : index
      %c0_10 = arith.constant 0 : index
      %19 = vector.load %arg7[%c0_9, %c0_10] : memref<8x128xf32, #tpu.memory_space<vmem>>, vector<8x128xf32>
      tpu.vector_store %arg7[%c0_9, %c0_10], %18 {strides = array<i32>} : memref<8x128xf32, #tpu.memory_space<vmem>>, vector<8x128xf32>,
    } else {
    }
    %c1_i32 = arith.constant 1 : i32
    %3 = arith.muli %arg0, %c1_i32 : i32
    %4 = arith.addi %3, %arg1 : i32
    %c1_i32_1 = arith.constant 1 : i32
    %5 = arith.addi %4, %c1_i32_1 : i32
    %c16_i32 = arith.constant 16 : i32
    %6 = arith.muli %5, %c16_i32 : i32
    %c16_i32_2 = arith.constant 16 : i32
    %7 = arith.cmpi sle, %6, %c16_i32_2 : i32
    %8 = arith.extui %7 : i1 to i32
    %c0_i32_3 = arith.constant 0 : i32
    %9 = arith.cmpi ne, %8, %c0_i32_3 : i32
    scf.if %9 {
      %c0 = arith.constant 0 : index
      %c0_7 = arith.constant 0 : index
      %16 = vector.load %arg3[%c0, %c0_7] : memref<16x128xi32, #tpu.memory_space<vmem>>, vector<16x128xi32>
      %c0_i32_8 = arith.constant 0 : i32
      %17 = vector.broadcast %c0_i32_8 : i32 to vector<16x128xi32>
      %18 = arith.cmpi sge, %16, %17 : vector<16x128xi32>
      %19 = arith.extui %18 : vector<16x128xi1> to vector<16x128xi32>
      %20 = arith.sitofp %19 : vector<16x128xi32> to vector<16x128xf32>
      %c0_9 = arith.constant 0 : index
      %c0_10 = arith.constant 0 : index
      %21 = vector.load %arg2[%c0_9, %c0_10] : memref<16x128xf32, #tpu.memory_space<vmem>>, vector<16x128xf32>
      %22 = arith.mulf %21, %20 : vector<16x128xf32>
      %c0_11 = arith.constant 0 : index
      %c0_12 = arith.constant 0 : index
      %23 = vector.load %arg6[%c0_11, %c0_12] : memref<8x128xf32, #tpu.memory_space<vmem>>, vector<8x128xf32>
      %24 = vector.shape_cast %22 : vector<16x128xf32> to vector<2x8x128xf32>
      %cst = arith.constant dense<0.000000e+00> : vector<8x128xf32>
      %25 = vector.multi_reduction <add>, %24, %cst [0] : vector<2x8x128xf32> to vector<8x128xf32>
      %26 = arith.addf %23, %25 : vector<8x128xf32>
      %c0_13 = arith.constant 0 : index
      %c0_14 = arith.constant 0 : index
      %27 = vector.load %arg6[%c0_13, %c0_14] : memref<8x128xf32, #tpu.memory_space<vmem>>, vector<8x128xf32>
      tpu.vector_store %arg6[%c0_13, %c0_14], %26 {strides = array<i32>} : memref<8x128xf32, #tpu.memory_space<vmem>>, vector<8x128xf32>,
      %c0_15 = arith.constant 0 : index
      %c0_16 = arith.constant 0 : index
      %28 = vector.load %arg7[%c0_15, %c0_16] : memref<8x128xf32, #tpu.memory_space<vmem>>, vector<8x128xf32>
      %29 = vector.shape_cast %20 : vector<16x128xf32> to vector<2x8x128xf32>
      %cst_17 = arith.constant dense<0.000000e+00> : vector<8x128xf32>
      %30 = vector.multi_reduction <add>, %29, %cst_17 [0] : vector<2x8x128xf32> to vector<8x128xf32>
      %31 = arith.addf %28, %30 : vector<8x128xf32>
      %c0_18 = arith.constant 0 : index
      %c0_19 = arith.constant 0 : index
      %32 = vector.load %arg7[%c0_18, %c0_19] : memref<8x128xf32, #tpu.memory_space<vmem>>, vector<8x128xf32>
      tpu.vector_store %arg7[%c0_18, %c0_19], %31 {strides = array<i32>} : memref<8x128xf32, #tpu.memory_space<vmem>>, vector<8x128xf32>,
    } else {
    }
    %true = arith.constant true
    %10 = arith.xori %7, %true : i1
    %11 = arith.extui %10 : i1 to i32
    %c0_i32_4 = arith.constant 0 : i32
    %12 = arith.cmpi ne, %11, %c0_i32_4 : i32
    scf.if %12 {
      %c16_i32_7 = arith.constant 16 : i32
      %16 = arith.muli %4, %c16_i32_7 : i32
      %17 = tpu.iota {dimensions = array<i32: 0>} : vector<16x128xi32>
      %18 = vector.broadcast %16 : i32 to vector<16x128xi32>
      %19 = arith.addi %18, %17 : vector<16x128xi32>
      %c16_i32_8 = arith.constant 16 : i32
      %20 = vector.broadcast %c16_i32_8 : i32 to vector<16x128xi32>
      %21 = arith.cmpi slt, %19, %20 : vector<16x128xi32>
      %c0 = arith.constant 0 : index
      %c0_9 = arith.constant 0 : index
      %22 = vector.load %arg3[%c0, %c0_9] : memref<16x128xi32, #tpu.memory_space<vmem>>, vector<16x128xi32>
      %c0_i32_10 = arith.constant 0 : i32
      %23 = vector.broadcast %c0_i32_10 : i32 to vector<16x128xi32>
      %24 = arith.cmpi sge, %22, %23 : vector<16x128xi32>
      %25 = arith.extui %24 : vector<16x128xi1> to vector<16x128xi32>
      %26 = arith.sitofp %25 : vector<16x128xi32> to vector<16x128xf32>
      %cst = arith.constant 0.000000e+00 : f32
      %27 = vector.broadcast %cst : f32 to vector<16x128xf32>
      %28 = arith.select %21, %26, %27 : vector<16x128xi1>, vector<16x128xf32>
      %c0_11 = arith.constant 0 : index
      %c0_12 = arith.constant 0 : index
      %29 = vector.load %arg2[%c0_11, %c0_12] : memref<16x128xf32, #tpu.memory_space<vmem>>, vector<16x128xf32>
      %cst_13 = arith.constant 0.000000e+00 : f32
      %30 = vector.broadcast %cst_13 : f32 to vector<16x128xf32>
      %31 = arith.select %21, %29, %30 : vector<16x128xi1>, vector<16x128xf32>
      %32 = arith.mulf %31, %28 : vector<16x128xf32>
      %c0_14 = arith.constant 0 : index
      %c0_15 = arith.constant 0 : index
      %33 = vector.load %arg6[%c0_14, %c0_15] : memref<8x128xf32, #tpu.memory_space<vmem>>, vector<8x128xf32>
      %34 = vector.shape_cast %32 : vector<16x128xf32> to vector<2x8x128xf32>
      %cst_16 = arith.constant dense<0.000000e+00> : vector<8x128xf32>
      %35 = vector.multi_reduction <add>, %34, %cst_16 [0] : vector<2x8x128xf32> to vector<8x128xf32>
      %36 = arith.addf %33, %35 : vector<8x128xf32>
      %c0_17 = arith.constant 0 : index
      %c0_18 = arith.constant 0 : index
      %37 = vector.load %arg6[%c0_17, %c0_18] : memref<8x128xf32, #tpu.memory_space<vmem>>, vector<8x128xf32>
      tpu.vector_store %arg6[%c0_17, %c0_18], %36 {strides = array<i32>} : memref<8x128xf32, #tpu.memory_space<vmem>>, vector<8x128xf32>,
      %c0_19 = arith.constant 0 : index
      %c0_20 = arith.constant 0 : index
      %38 = vector.load %arg7[%c0_19, %c0_20] : memref<8x128xf32, #tpu.memory_space<vmem>>, vector<8x128xf32>
      %39 = vector.shape_cast %28 : vector<16x128xf32> to vector<2x8x128xf32>
      %cst_21 = arith.constant dense<0.000000e+00> : vector<8x128xf32>
      %40 = vector.multi_reduction <add>, %39, %cst_21 [0] : vector<2x8x128xf32> to vector<8x128xf32>
      %41 = arith.addf %38, %40 : vector<8x128xf32>
      %c0_22 = arith.constant 0 : index
      %c0_23 = arith.constant 0 : index
      %42 = vector.load %arg7[%c0_22, %c0_23] : memref<8x128xf32, #tpu.memory_space<vmem>>, vector<8x128xf32>
      tpu.vector_store %arg7[%c0_22, %c0_23], %41 {strides = array<i32>} : memref<8x128xf32, #tpu.memory_space<vmem>>, vector<8x128xf32>,
    } else {
    }
    %c0_i32_5 = arith.constant 0 : i32
    %13 = arith.cmpi eq, %arg1, %c0_i32_5 : i32
    %14 = arith.extui %13 : i1 to i32
    %c0_i32_6 = arith.constant 0 : i32
    %15 = arith.cmpi ne, %14, %c0_i32_6 : i32
    scf.if %15 {
      %c0 = arith.constant 0 : index
      %c0_7 = arith.constant 0 : index
      %16 = vector.load %arg6[%c0, %c0_7] : memref<8x128xf32, #tpu.memory_space<vmem>>, vector<8x128xf32>
      %17 = vector.shape_cast %16 : vector<8x128xf32> to vector<1x8x128xf32>
      %cst = arith.constant dense<0.000000e+00> : vector<1xf32>
      %18 = vector.multi_reduction <add>, %17, %cst [1, 2] : vector<1x8x128xf32> to vector<1xf32>
      %19 = vector.shape_cast %18 : vector<1xf32> to vector<1x1x1xf32>
      %20 = vector.extract %19[0, 0, 0] : f32 from vector<1x1x1xf32>
      %21 = vector.broadcast %20 : f32 to vector<1x8x128xf32>
      %c0_8 = arith.constant 0 : index
      %c0_9 = arith.constant 0 : index
      %c0_10 = arith.constant 0 : index
      %22 = vector.load %arg4[%c0_8, %c0_9, %c0_10] : memref<1x8x128xf32, #tpu.memory_space<vmem>>, vector<1x8x128xf32>
      tpu.vector_store %arg4[%c0_8, %c0_9, %c0_10], %21 {strides = array<i32>} : memref<1x8x128xf32, #tpu.memory_space<vmem>>, vector<1x8x128xf32>,
      %c0_11 = arith.constant 0 : index
      %c0_12 = arith.constant 0 : index
      %23 = vector.load %arg7[%c0_11, %c0_12] : memref<8x128xf32, #tpu.memory_space<vmem>>, vector<8x128xf32>
      %24 = vector.shape_cast %23 : vector<8x128xf32> to vector<1x8x128xf32>
      %cst_13 = arith.constant dense<0.000000e+00> : vector<1xf32>
      %25 = vector.multi_reduction <add>, %24, %cst_13 [1, 2] : vector<1x8x128xf32> to vector<1xf32>
      %26 = vector.shape_cast %25 : vector<1xf32> to vector<1x1x1xf32>
      %27 = vector.extract %26[0, 0, 0] : f32 from vector<1x1x1xf32>
      %28 = vector.broadcast %27 : f32 to vector<1x8x128xf32>
      %c0_14 = arith.constant 0 : index
      %c0_15 = arith.constant 0 : index
      %c0_16 = arith.constant 0 : index
      %29 = vector.load %arg5[%c0_14, %c0_15, %c0_16] : memref<1x8x128xf32, #tpu.memory_space<vmem>>, vector<1x8x128xf32>
      tpu.vector_store %arg5[%c0_14, %c0_15, %c0_16], %28 {strides = array<i32>} : memref<1x8x128xf32, #tpu.memory_space<vmem>>, vector<1x8x128xf32>,
    } else {
    }
    return
  }
  func.func @transform_0(%arg0: i32, %arg1: i32) -> (i32, i32) {
    %c1_i32 = arith.constant 1 : i32
    %0 = arith.muli %arg0, %c1_i32 : i32
    %1 = arith.addi %0, %arg1 : i32
    %c0_i32 = arith.constant 0 : i32
    %2 = arith.minsi %1, %c0_i32 : i32
    %c0_i32_0 = arith.constant 0 : i32
    %c0_i32_1 = arith.constant 0 : i32
    return %2, %c0_i32_0 : i32, i32
  }
  func.func @transform_1(%arg0: i32, %arg1: i32) -> (i32, i32) {
    %c1_i32 = arith.constant 1 : i32
    %0 = arith.muli %arg0, %c1_i32 : i32
    %1 = arith.addi %0, %arg1 : i32
    %c0_i32 = arith.constant 0 : i32
    %2 = arith.minsi %1, %c0_i32 : i32
    %c0_i32_0 = arith.constant 0 : i32
    %c0_i32_1 = arith.constant 0 : i32
    return %2, %c0_i32_0 : i32, i32
  }
  func.func @transform_2(%arg0: i32, %arg1: i32) -> (i32, i32, i32) {
    %c0_i32 = arith.constant 0 : i32
    %c0_i32_0 = arith.constant 0 : i32
    %c0_i32_1 = arith.constant 0 : i32
    return %arg0, %c0_i32, %c0_i32_0 : i32, i32, i32
  }
  func.func @transform_3(%arg0: i32, %arg1: i32) -> (i32, i32, i32) {
    %c0_i32 = arith.constant 0 : i32
    %c0_i32_0 = arith.constant 0 : i32
    %c0_i32_1 = arith.constant 0 : i32
    return %arg0, %c0_i32, %c0_i32_0 : i32, i32, i32
  }
}

</mosaic_0001>

<bundles_post_ra>
// kernel: range_shrink_sum.1
= control target key start
LH: loop header
LB: loop body
LE: loop exit
PB: predicated region body
PF: predicated region fallthrough
CT: control target
= control target key end

     0   :  { %v203_v4 = vmov 0.0   ;;  %s242_s0 = inlined_call_operand.vmem [shape: f32[16,128], index: 0, kind: input, shape index: {}]   ;;  %s243_s1 = inlined_call_operand.vmem [shape: s32[16,128], index: 1, kind: input, shape index: {}]   ;;  %s244_s2 = inlined_call_operand.vmem [shape: f32[1,8,128], index: 2, kind: output, shape index: {0}]   ;;  %s245_s3 = inlined_call_operand.vmem [shape: f32[1,8,128], index: 3, kind: output, shape index: {1}]  }
   0x1   :  { %v90_v0 = vld [vmem:[%s243_s1] sm:$0xff]  ;;  %v91_v1 = vld [vmem:[%s243_s1 + $0x8] sm:$0xff] }
   0x2   :  { %v98_v2 = vld [vmem:[%s242_s0] sm:$0xff]  ;;  %vm92_vm0 = vcmp.ge.s32.totalorder %v90_v0, 0  ;;  %vm93_vm1 = vcmp.ge.s32.totalorder %v91_v1, 0  ;;  %v99_v3 = vld [vmem:[%s242_s0 + $0x8] sm:$0xff] }
   0x3   :  { %v194_v5 = vsel %vm92_vm0, 1.0, %v203_v4  ;;  %v195_v6 = vsel %vm93_vm1, 1.0, %v203_v4 }
   0x4   :  { %v100_v7 = vmul.f32 %v194_v5, %v98_v2  ;;  %v101_v8 = vmul.f32 %v195_v6, %v99_v3  ;;  %v107_v10 = vadd.f32 %v195_v6, %v194_v5 }
   0x6   :  { %v103_v9 = vadd.f32 %v101_v8, %v100_v7 }
   0x8   :  { %151 = vadd.xlane.f32.xlu0 %v103_v9 }
   0xc   :  { %163 = vadd.xlane.f32.xlu0 %v107_v10 }
  0x95   :  { %v152_v11 = vpop.xlane.xlu0 %151 }
  0x96   :  { %v153_v12 = vrot.slane %v152_v11, 4 }
  0x98   :  { %v154_v13 = vadd.f32 %v153_v12, %v152_v11 }
  0x99   :  { %v164_v14 = vpop.xlane.xlu0 %163 }
  0x9a   :  { %v155_v15 = vrot.slane %v154_v13, 2  ;;  %v165_v16 = vrot.slane %v164_v14, 4 }
  0x9c   :  { %v166_v17 = vadd.f32 %v165_v16, %v164_v14  ;;  %v156_v18 = vadd.f32 %v155_v15, %v154_v13 }
  0x9e   :  { %v167_v19 = vrot.slane %v166_v17, 2  ;;  %v157_v20 = vrot.slane %v156_v18, 1 }
  0xa0   :  { %v168_v21 = vadd.f32 %v167_v19, %v166_v17  ;;  %v158_v22 = vadd.f32 %v157_v20, %v156_v18 }
  0xa2   :  { %198 = vpush %v158_v22  ;;  %v169_v23 = vrot.slane %v168_v21, 1 }
  0xa4   :  { %v170_v24 = vadd.f32 %v169_v23, %v168_v21 }
  0xa6   :  { %200 = vpush %v170_v24 }
  0xd3   :  { %s199_s0 = spop %198 }
  0xd4   :  { %v160_v25 = vstv %s199_s0 }
  0xd5   :  { %161 = vst [vmem:[%s244_s2] sm:$0xff] %v160_v25 }
  0xd7   :  { %s201_s21 = spop %200 }
  0xd8   :  { %v172_v26 = vstv %s201_s21 }
  0xd9   :  { %173 = vst [vmem:[%s245_s3] sm:$0xff] %v172_v26 }

</bundles_post_ra>
